<compile_context>
chip_gen: v7x
topology: tpu7x:2x2x1
jax: 0.10.0
libtpu: 0.0.40
codegen_flags: <defaults>
</compile_context>

<pallas_src>
import functools

import jax
import jax.numpy as jnp
from jax.experimental import pallas as pl
from jax.experimental.pallas import tpu as pltpu


def _vmem_limit(nbytes):
    """Explicit scoped-VMEM ceiling (defaults are only 16/32 MiB): 2x headroom
    over the double-buffered working set, clamped to [32 MiB, 128 MiB]."""
    return int(min(max(2 * nbytes + (8 << 20), 32 << 20), 128 << 20))


# ----------------------------------------------------------------------------
# Kernel 1: fused projection (reduce_dim + fwd/bwd LSTM input projections).
#   emb:[rt,E]  w_red:[E,H]  w_ih:[2,H,4Hh]  b_eff:[2,1,4Hh]  gx:[2,rt,4Hh]
# ----------------------------------------------------------------------------
def _proj_kernel(emb_ref, wred_ref, wih_ref, beff_ref, gx_ref):
    red = jnp.dot(emb_ref[...], wred_ref[...],
                  preferred_element_type=jnp.float32)
    red = red.astype(wih_ref.dtype)
    gx_ref[0] = (jnp.dot(red, wih_ref[0], preferred_element_type=jnp.float32)
                 + beff_ref[0]).astype(gx_ref.dtype)
    gx_ref[1] = (jnp.dot(red, wih_ref[1], preferred_element_type=jnp.float32)
                 + beff_ref[1]).astype(gx_ref.dtype)


def _projection(emb_flat, w_red, w_ih, b_eff, row_tile, out_dtype):
    Np, E = emb_flat.shape
    H = w_red.shape[1]
    G4 = w_ih.shape[2]                      # 4 * Hh
    esz = jnp.dtype(emb_flat.dtype).itemsize
    wsz = jnp.dtype(w_red.dtype).itemsize
    osz = jnp.dtype(out_dtype).itemsize
    work = (2 * row_tile * E * esz                       # emb, double-buffered
            + E * H * wsz + 2 * H * G4 * wsz + 2 * G4 * 4   # weights/bias
            + 2 * 2 * row_tile * G4 * osz)               # gx out, double-buffered
    return pl.pallas_call(
        _proj_kernel,
        out_shape=jax.ShapeDtypeStruct((2, Np, G4), out_dtype),
        grid=(Np // row_tile,),
        in_specs=[
            pl.BlockSpec((row_tile, E), lambda i: (i, 0)),
            # constant-index weight/bias blocks (fetched once, revisited)
            pl.BlockSpec((E, H), lambda i: (0, 0)),
            pl.BlockSpec((2, H, G4), lambda i: (0, 0, 0)),
            pl.BlockSpec((2, 1, G4), lambda i: (0, 0, 0)),
        ],
        out_specs=pl.BlockSpec((2, row_tile, G4), lambda i: (0, i, 0)),
        compiler_params=pltpu.CompilerParams(
            dimension_semantics=("parallel",),
            vmem_limit_bytes=_vmem_limit(work)),
    )(emb_flat, w_red, w_ih, b_eff)


# ----------------------------------------------------------------------------
# Kernel 2: fused bidirectional masked LSTM recurrence, time-chunked.
#   gx:[t_chunk,B,4Hh]  m:[t_chunk,B,1]  whh:[Hh,4Hh]  out:[t_chunk,B,Hh]
#   h/c scratch: [B,Hh] (batch on sublanes, hidden on lanes), persistent
#   across time chunks of one direction.
# ----------------------------------------------------------------------------
def _bilstm_kernel(gx_ref, m_ref, whh_ref, out_ref, h_scr, c_scr):
    d = pl.program_id(0)          # 0 = forward direction, 1 = backward
    c_idx = pl.program_id(1)      # time-chunk counter (chunk order reversed
                                  # for d=1 by the index_maps)
    tc = gx_ref.shape[0]
    Hh = h_scr.shape[1]

    @pl.when(c_idx == 0)
    def _():
        h_scr[...] = jnp.zeros_like(h_scr)
        c_scr[...] = jnp.zeros_like(c_scr)

    whh = whh_ref[...]            # [Hh, 4*Hh], hoisted out of the time loop

    def step(s, carry):
        h, c = carry
        # local time inside the chunk: ascending for fwd, descending for bwd
        idx = s + d * (tc - 1 - 2 * s)
        g = (gx_ref[idx].astype(jnp.float32)
             + jnp.dot(h.astype(whh.dtype), whh,
                       preferred_element_type=jnp.float32))       # [B, 4*Hh]
        # PyTorch gate order i, f, g, o; slices land on the lane axis.
        i_g = jax.nn.sigmoid(g[:, 0 * Hh:1 * Hh])
        f_g = jax.nn.sigmoid(g[:, 1 * Hh:2 * Hh])
        g_g = jnp.tanh(g[:, 2 * Hh:3 * Hh])
        o_g = jax.nn.sigmoid(g[:, 3 * Hh:4 * Hh])
        c_new = f_g * c + i_g * g_g
        h_new = o_g * jnp.tanh(c_new)
        m = m_ref[idx].astype(jnp.float32)                        # [B, 1]
        out_ref[idx] = (h_new * m).astype(out_ref.dtype)          # lane-dense
        # masked (pad) steps carry the previous state through
        h = h + m * (h_new - h)
        c = c + m * (c_new - c)
        return h, c

    h_fin, c_fin = jax.lax.fori_loop(0, tc, step, (h_scr[...], c_scr[...]),
                                     unroll=min(4, tc))
    h_scr[...] = h_fin
    c_scr[...] = c_fin


def _bilstm(gx, mask_t, whh_t, t_chunk, out_dtype):
    _, Tp, B, G4 = gx.shape
    Hh = G4 // 4
    nc = Tp // t_chunk

    def t_blk(d, c):              # chunk c for fwd, chunk nc-1-c for bwd
        return c + d * (nc - 1 - 2 * c)

    gsz = jnp.dtype(gx.dtype).itemsize
    wsz = jnp.dtype(whh_t.dtype).itemsize
    osz = jnp.dtype(out_dtype).itemsize
    work = (2 * t_chunk * B * G4 * gsz          # gx chunk, double-buffered
            + 2 * t_chunk * B * 4               # mask chunk
            + 2 * Hh * G4 * wsz                 # whh
            + 2 * t_chunk * B * Hh * osz        # out chunk
            + 2 * B * Hh * 4)                   # h/c scratch

    return pl.pallas_call(
        _bilstm_kernel,
        out_shape=jax.ShapeDtypeStruct((2, Tp, B, Hh), out_dtype),
        grid=(2, nc),
        in_specs=[
            pl.BlockSpec((None, t_chunk, B, G4),
                         lambda d, c: (d, t_blk(d, c), 0, 0)),
            pl.BlockSpec((t_chunk, B, 1),
                         lambda d, c: (t_blk(d, c), 0, 0)),
            pl.BlockSpec((None, Hh, G4), lambda d, c: (d, 0, 0)),
        ],
        out_specs=pl.BlockSpec((None, t_chunk, B, Hh),
                               lambda d, c: (d, t_blk(d, c), 0, 0)),
        scratch_shapes=[pltpu.VMEM((B, Hh), jnp.float32),
                        pltpu.VMEM((B, Hh), jnp.float32)],
        compiler_params=pltpu.CompilerParams(
            dimension_semantics=("parallel", "arbitrary"),
            vmem_limit_bytes=_vmem_limit(work)),
    )(gx, mask_t, whh_t)


# ----------------------------------------------------------------------------
# Parameters (synthetic, deterministic) and the forward wrapper.
# ----------------------------------------------------------------------------
def init_params(key, emb_dim, hidden_dim):
    Hh = hidden_dim // 2
    ks = jax.random.split(key, 8)
    s = 0.1
    return {
        # reduce_dim: Linear(emb_dim, hidden_dim)   (stored transposed)
        "w_red": s * jax.random.normal(ks[0], (emb_dim, hidden_dim), jnp.float32),
        "b_red": s * jax.random.normal(ks[1], (1, hidden_dim), jnp.float32),
        # forward LSTM direction
        "wih_f": s * jax.random.normal(ks[2], (hidden_dim, 4 * Hh), jnp.float32),
        "whh_f": s * jax.random.normal(ks[3], (4 * Hh, Hh), jnp.float32),
        "b_f":   s * jax.random.normal(ks[4], (1, 4 * Hh), jnp.float32),
        # backward LSTM direction
        "wih_b": s * jax.random.normal(ks[5], (hidden_dim, 4 * Hh), jnp.float32),
        "whh_b": s * jax.random.normal(ks[6], (4 * Hh, Hh), jnp.float32),
        "b_b":   s * jax.random.normal(ks[7], (1, 4 * Hh), jnp.float32),
    }


@functools.partial(jax.jit,
                   static_argnames=("t_chunk", "row_tile", "compute_dtype"))
def encoder_forward(embeddings, masks, params, *, t_chunk=32, row_tile=512,
                    compute_dtype=jnp.float32):
    """embeddings: [B, T, emb_dim] (concat of token/char/lm), masks: [B, T].

    t_chunk  : time-chunk streamed through the recurrence kernel (32 fits
               v7x's 64 MiB VMEM at realistic Hh/B; raise on v5e/v6e).
    row_tile : row tile of the fused projection matmul (multiple of 8;
               512 is v7x-safe, 512-1024 on v6e).
    compute_dtype: jnp.bfloat16 on v6e/v7x halves weight/activation DMA; the
               accumulation and h/c state stay float32 either way (keep f32
               on v5e: no native bf16 VPU/EUP).
    """
    B, T, E = embeddings.shape
    H = params["w_red"].shape[1]
    Hh = H // 2
    assert H % 2 == 0, "hidden_dim must be even"
    assert row_tile % 8 == 0, "row_tile must be a multiple of 8"

    # dropout_layer (both occurrences): eval-mode identity (no-op).

    # ---- time-major layout (cheap minor-dim-preserving transpose), pad T ----
    tc = max(1, min(t_chunk, T))
    Tp = -(-T // tc) * tc
    emb_t = jnp.transpose(embeddings, (1, 0, 2))                 # [T, B, E]
    mask_t = jnp.transpose(masks.astype(jnp.float32), (1, 0))    # [T, B]
    if Tp != T:
        emb_t = jnp.pad(emb_t, ((0, Tp - T), (0, 0), (0, 0)))
        mask_t = jnp.pad(mask_t, ((0, Tp - T), (0, 0)))

    # ---- kernel 1: reduce_dim + both LSTM input projections ----
    N = Tp * B
    rt = max(8, (min(row_tile, N) // 8) * 8)
    Np = -(-N // rt) * rt
    emb_flat = emb_t.reshape(N, E).astype(compute_dtype)
    if Np != N:
        emb_flat = jnp.pad(emb_flat, ((0, Np - N), (0, 0)))

    w_red = params["w_red"].astype(compute_dtype)
    w_ih = jnp.stack([params["wih_f"], params["wih_b"]]
                     ).astype(compute_dtype)                     # [2, H, 4Hh]
    hp = jax.lax.Precision.HIGHEST
    # fold reduce_dim bias into the input-projection bias: b_eff = b + b_red@Wih
    b_eff = jnp.stack([
        params["b_f"] + jnp.dot(params["b_red"], params["wih_f"], precision=hp),
        params["b_b"] + jnp.dot(params["b_red"], params["wih_b"], precision=hp),
    ]).astype(jnp.float32)                                       # [2, 1, 4Hh]

    gx = _projection(emb_flat, w_red, w_ih, b_eff, rt, compute_dtype)
    gx = gx[:, :N].reshape(2, Tp, B, 4 * Hh)                     # [2,Tp,B,4Hh]

    # ---- kernel 2: fused bidirectional masked recurrence ----
    whh_t = jnp.stack([params["whh_f"].T, params["whh_b"].T]
                      ).astype(compute_dtype)                    # [2, Hh, 4Hh]
    mask_k = mask_t[:, :, None]                                  # [Tp, B, 1]
    out = _bilstm(gx, mask_k, whh_t, tc, compute_dtype)          # [2,Tp,B,Hh]

    # concat fwd|bwd along features and back to batch_first; minor dim (Hh)
    # preserved, so no lane-moving relayout.
    enc = jnp.transpose(out, (2, 1, 0, 3)).reshape(B, Tp, H)[:, :T, :]

    return {"embeddings": enc, "masks": masks}


# ----------------------------------------------------------------------------
# Pure-JAX reference (for correctness checking only).
# ----------------------------------------------------------------------------
@jax.jit
def _reference_forward(embeddings, masks, params):
    H = params["w_red"].shape[1]
    Hh = H // 2
    hp = jax.lax.Precision.HIGHEST
    red = jnp.dot(embeddings, params["w_red"], precision=hp) + params["b_red"]

    def run_dir(x, m, wih, whh, b):
        Bb = x.shape[0]
        gx = jnp.dot(x, wih, precision=hp) + b                   # [B, T, 4Hh]

        def step(carry, inp):
            h, c = carry
            g_x, mt = inp
            g = g_x + jnp.dot(h, whh.T, precision=hp)
            i = jax.nn.sigmoid(g[:, 0 * Hh:1 * Hh])
            f = jax.nn.sigmoid(g[:, 1 * Hh:2 * Hh])
            gg = jnp.tanh(g[:, 2 * Hh:3 * Hh])
            o = jax.nn.sigmoid(g[:, 3 * Hh:4 * Hh])
            c_new = f * c + i * gg
            h_new = o * jnp.tanh(c_new)
            mt = mt[:, None]
            out = h_new * mt
            return ((mt * h_new + (1 - mt) * h,
                     mt * c_new + (1 - mt) * c), out)

        init = (jnp.zeros((Bb, Hh), jnp.float32),
                jnp.zeros((Bb, Hh), jnp.float32))
        _, outs = jax.lax.scan(step, init,
                               (jnp.transpose(gx, (1, 0, 2)),
                                jnp.transpose(m, (1, 0))))
        return jnp.transpose(outs, (1, 0, 2))

    fwd = run_dir(red, masks, params["wih_f"], params["whh_f"], params["b_f"])
    bwd = run_dir(red[:, ::-1], masks[:, ::-1],
                  params["wih_b"], params["whh_b"], params["b_b"])[:, ::-1]
    return jnp.concatenate([fwd, bwd], axis=-1)


if __name__ == "__main__":
    B, T = 2, 10
    TOKEN_EMB, CHAR_EMB, LM_EMB = 16, 16, 16
    E = TOKEN_EMB + CHAR_EMB + LM_EMB    # emb_dim = token + char + lm
    H = 32                               # config.hidden_dim

    key = jax.random.PRNGKey(0)
    k_emb, k_par = jax.random.split(key)

    embeddings = jax.random.normal(k_emb, (B, T, E), jnp.float32)
    masks = jnp.ones((B, T), jnp.float32).at[1, 7:].set(0.0)  # seq 1 has len 7

    params = init_params(k_par, E, H)

    out = encoder_forward(embeddings, masks, params, t_chunk=4, row_tile=8)
    jax.block_until_ready(out)

    assert out["embeddings"].shape == (B, T, H)
    assert out["masks"].shape == (B, T)
    # masked (pad) positions must encode to exactly zero
    assert bool(jnp.all(out["embeddings"][1, 7:] == 0.0))

    ref = _reference_forward(embeddings, masks, params)
    err = float(jnp.max(jnp.abs(out["embeddings"] - ref)))
    assert err < 1e-2, f"mismatch vs reference: {err}"

    print("KERNEL_OK")
</pallas_src>

<mosaic_0001>
module attributes {stable_mosaic.version = 11 : i64} {
  func.func @_proj_kernel(%arg0: i32, %arg1: memref<8x48xf32, #tpu.memory_space<vmem>>, %arg2: memref<48x32xf32, #tpu.memory_space<vmem>>, %arg3: memref<2x32x64xf32, #tpu.memory_space<vmem>>, %arg4: memref<2x1x64xf32, #tpu.memory_space<vmem>>, %arg5: memref<2x8x64xf32, #tpu.memory_space<vmem>>) attributes {dimension_semantics = [#tpu.dimension_semantics<parallel>], iteration_bounds = array<i64: 3>, scalar_prefetch = 0 : i64, scratch_operands = 0 : i64, tpu.core_type = #tpu.core_type<tc>, window_params = [{transform_indices = @transform_0, window_bounds = array<i64: 8, 48>}, {pipeline_mode = #tpu.pipeline_mode<synchronous>, transform_indices = @transform_1, window_bounds = array<i64: 48, 32>}, {pipeline_mode = #tpu.pipeline_mode<synchronous>, transform_indices = @transform_2, window_bounds = array<i64: 2, 32, 64>}, {pipeline_mode = #tpu.pipeline_mode<synchronous>, transform_indices = @transform_3, window_bounds = array<i64: 2, 1, 64>}, {transform_indices = @transform_4, window_bounds = array<i64: 2, 8, 64>}]} {
    %c0 = arith.constant 0 : index
    %c0_0 = arith.constant 0 : index
    %0 = vector.load %arg1[%c0, %c0_0] : memref<8x48xf32, #tpu.memory_space<vmem>>, vector<8x48xf32>
    %c0_1 = arith.constant 0 : index
    %c0_2 = arith.constant 0 : index
    %1 = vector.load %arg2[%c0_1, %c0_2] : memref<48x32xf32, #tpu.memory_space<vmem>>, vector<48x32xf32>
    %cst = arith.constant dense<0.000000e+00> : vector<8x32xf32>
    %2 = tpu.matmul %0, %1, %cst {dimension_numbers = #tpu.dot_dimension_numbers<[1], [0], [0], [1], [0, 0, 1, 1], [], []>} : vector<8x48xf32>, vector<48x32xf32>, vector<8x32xf32> -> vector<8x32xf32>
    %c0_3 = arith.constant 0 : index
    %c0_4 = arith.constant 0 : index
    %c0_5 = arith.constant 0 : index
    %3 = vector.load %arg3[%c0_3, %c0_4, %c0_5] : memref<2x32x64xf32, #tpu.memory_space<vmem>>, vector<1x32x64xf32>
    %4 = vector.shape_cast %3 : vector<1x32x64xf32> to vector<32x64xf32>
    %cst_6 = arith.constant dense<0.000000e+00> : vector<8x64xf32>
    %5 = tpu.matmul %2, %4, %cst_6 {dimension_numbers = #tpu.dot_dimension_numbers<[1], [0], [0], [1], [0, 0, 1, 1], [], []>} : vector<8x32xf32>, vector<32x64xf32>, vector<8x64xf32> -> vector<8x64xf32>
    %c0_7 = arith.constant 0 : index
    %c0_8 = arith.constant 0 : index
    %c0_9 = arith.constant 0 : index
    %6 = vector.load %arg4[%c0_7, %c0_8, %c0_9] : memref<2x1x64xf32, #tpu.memory_space<vmem>>, vector<1x1x64xf32>
    %7 = vector.shape_cast %6 : vector<1x1x64xf32> to vector<1x64xf32>
    %8 = vector.broadcast %7 : vector<1x64xf32> to vector<8x64xf32>
    %9 = arith.addf %5, %8 : vector<8x64xf32>
    %c0_10 = arith.constant 0 : index
    %c0_11 = arith.constant 0 : index
    %c0_12 = arith.constant 0 : index
    %10 = vector.load %arg5[%c0_10, %c0_11, %c0_12] : memref<2x8x64xf32, #tpu.memory_space<vmem>>, vector<1x8x64xf32>
    %11 = vector.shape_cast %10 : vector<1x8x64xf32> to vector<8x64xf32>
    %12 = vector.shape_cast %9 : vector<8x64xf32> to vector<1x8x64xf32>
    tpu.vector_store %arg5[%c0_10, %c0_11, %c0_12], %12 {strides = array<i32>} : memref<2x8x64xf32, #tpu.memory_space<vmem>>, vector<1x8x64xf32>,
    %c1 = arith.constant 1 : index
    %c0_13 = arith.constant 0 : index
    %c0_14 = arith.constant 0 : index
    %13 = vector.load %arg3[%c1, %c0_13, %c0_14] : memref<2x32x64xf32, #tpu.memory_space<vmem>>, vector<1x32x64xf32>
    %14 = vector.shape_cast %13 : vector<1x32x64xf32> to vector<32x64xf32>
    %cst_15 = arith.constant dense<0.000000e+00> : vector<8x64xf32>
    %15 = tpu.matmul %2, %14, %cst_15 {dimension_numbers = #tpu.dot_dimension_numbers<[1], [0], [0], [1], [0, 0, 1, 1], [], []>} : vector<8x32xf32>, vector<32x64xf32>, vector<8x64xf32> -> vector<8x64xf32>
    %c1_16 = arith.constant 1 : index
    %c0_17 = arith.constant 0 : index
    %c0_18 = arith.constant 0 : index
    %16 = vector.load %arg4[%c1_16, %c0_17, %c0_18] : memref<2x1x64xf32, #tpu.memory_space<vmem>>, vector<1x1x64xf32>
    %17 = vector.shape_cast %16 : vector<1x1x64xf32> to vector<1x64xf32>
    %18 = vector.broadcast %17 : vector<1x64xf32> to vector<8x64xf32>
    %19 = arith.addf %15, %18 : vector<8x64xf32>
    %c1_19 = arith.constant 1 : index
    %c0_20 = arith.constant 0 : index
    %c0_21 = arith.constant 0 : index
    %20 = vector.load %arg5[%c1_19, %c0_20, %c0_21] : memref<2x8x64xf32, #tpu.memory_space<vmem>>, vector<1x8x64xf32>
    %21 = vector.shape_cast %20 : vector<1x8x64xf32> to vector<8x64xf32>
    %22 = vector.shape_cast %19 : vector<8x64xf32> to vector<1x8x64xf32>
    tpu.vector_store %arg5[%c1_19, %c0_20, %c0_21], %22 {strides = array<i32>} : memref<2x8x64xf32, #tpu.memory_space<vmem>>, vector<1x8x64xf32>,
    return
  }
  func.func @transform_0(%arg0: i32) -> (i32, i32) {
    %c0_i32 = arith.constant 0 : i32
    %c0_i32_0 = arith.constant 0 : i32
    return %arg0, %c0_i32 : i32, i32
  }
  func.func @transform_1(%arg0: i32) -> (i32, i32) {
    %c0_i32 = arith.constant 0 : i32
    %c0_i32_0 = arith.constant 0 : i32
    %c0_i32_1 = arith.constant 0 : i32
    return %c0_i32, %c0_i32_0 : i32, i32
  }
  func.func @transform_2(%arg0: i32) -> (i32, i32, i32) {
    %c0_i32 = arith.constant 0 : i32
    %c0_i32_0 = arith.constant 0 : i32
    %c0_i32_1 = arith.constant 0 : i32
    %c0_i32_2 = arith.constant 0 : i32
    return %c0_i32, %c0_i32_0, %c0_i32_1 : i32, i32, i32
  }
  func.func @transform_3(%arg0: i32) -> (i32, i32, i32) {
    %c0_i32 = arith.constant 0 : i32
    %c0_i32_0 = arith.constant 0 : i32
    %c0_i32_1 = arith.constant 0 : i32
    %c0_i32_2 = arith.constant 0 : i32
    return %c0_i32, %c0_i32_0, %c0_i32_1 : i32, i32, i32
  }
  func.func @transform_4(%arg0: i32) -> (i32, i32, i32) {
    %c0_i32 = arith.constant 0 : i32
    %c0_i32_0 = arith.constant 0 : i32
    %c0_i32_1 = arith.constant 0 : i32
    return %c0_i32, %arg0, %c0_i32_0 : i32, i32, i32
  }
}

module attributes {stable_mosaic.version = 11 : i64} {
  func.func @_bilstm_kernel(%arg0: i32, %arg1: i32, %arg2: memref<1x4x2x64xf32, #tpu.memory_space<vmem>>, %arg3: memref<4x2x1xf32, #tpu.memory_space<vmem>>, %arg4: memref<1x16x64xf32, #tpu.memory_space<vmem>>, %arg5: memref<1x4x2x16xf32, #tpu.memory_space<vmem>>, %arg6: memref<2x16xf32, #tpu.memory_space<vmem>>, %arg7: memref<2x16xf32, #tpu.memory_space<vmem>>) attributes {dimension_semantics = [#tpu.dimension_semantics<parallel>, #tpu.dimension_semantics<arbitrary>], iteration_bounds = array<i64: 2, 3>, scalar_prefetch = 0 : i64, scratch_operands = 2 : i64, tpu.core_type = #tpu.core_type<tc>, window_params = [{transform_indices = @transform_0, window_bounds = array<i64: 1, 4, 2, 64>}, {transform_indices = @transform_1, window_bounds = array<i64: 4, 2, 1>}, {transform_indices = @transform_2, window_bounds = array<i64: 1, 16, 64>}, {transform_indices = @transform_3, window_bounds = array<i64: 1, 4, 2, 16>}]} {
    %c0_i32 = arith.constant 0 : i32
    %0 = arith.cmpi eq, %arg1, %c0_i32 : i32
    %1 = arith.extui %0 : i1 to i32
    %c0_i32_0 = arith.constant 0 : i32
    %2 = arith.cmpi ne, %1, %c0_i32_0 : i32
    scf.if %2 {
      %cst_67 = arith.constant 0.000000e+00 : f32
      %213 = vector.broadcast %cst_67 : f32 to vector<2x16xf32>
      %c0_68 = arith.constant 0 : index
      %c0_69 = arith.constant 0 : index
      %214 = vector.load %arg6[%c0_68, %c0_69] : memref<2x16xf32, #tpu.memory_space<vmem>>, vector<2x16xf32>
      tpu.vector_store %arg6[%c0_68, %c0_69], %213 {strides = array<i32>} : memref<2x16xf32, #tpu.memory_space<vmem>>, vector<2x16xf32>,
      %cst_70 = arith.constant 0.000000e+00 : f32
      %215 = vector.broadcast %cst_70 : f32 to vector<2x16xf32>
      %c0_71 = arith.constant 0 : index
      %c0_72 = arith.constant 0 : index
      %216 = vector.load %arg7[%c0_71, %c0_72] : memref<2x16xf32, #tpu.memory_space<vmem>>, vector<2x16xf32>
      tpu.vector_store %arg7[%c0_71, %c0_72], %215 {strides = array<i32>} : memref<2x16xf32, #tpu.memory_space<vmem>>, vector<2x16xf32>,
    } else {
    }
    %c0 = arith.constant 0 : index
    %c0_1 = arith.constant 0 : index
    %c0_2 = arith.constant 0 : index
    %3 = vector.load %arg4[%c0, %c0_1, %c0_2] : memref<1x16x64xf32, #tpu.memory_space<vmem>>, vector<1x16x64xf32>
    %4 = vector.shape_cast %3 : vector<1x16x64xf32> to vector<16x64xf32>
    %c0_3 = arith.constant 0 : index
    %c0_4 = arith.constant 0 : index
    %5 = vector.load %arg6[%c0_3, %c0_4] : memref<2x16xf32, #tpu.memory_space<vmem>>, vector<2x16xf32>
    %c0_5 = arith.constant 0 : index
    %c0_6 = arith.constant 0 : index
    %6 = vector.load %arg7[%c0_5, %c0_6] : memref<2x16xf32, #tpu.memory_space<vmem>>, vector<2x16xf32>
    %c0_i32_7 = arith.constant 0 : i32
    %c2_i32 = arith.constant 2 : i32
    %7 = arith.muli %c2_i32, %c0_i32_7 : i32
    %c3_i32 = arith.constant 3 : i32
    %8 = arith.subi %c3_i32, %7 : i32
    %9 = arith.muli %arg0, %8 : i32
    %10 = arith.addi %c0_i32_7, %9 : i32
    %c0_8 = arith.constant 0 : index
    %11 = arith.index_cast %10 : i32 to index
    %c0_9 = arith.constant 0 : index
    %c0_10 = arith.constant 0 : index
    %12 = vector.load %arg2[%c0_8, %11, %c0_9, %c0_10] : memref<1x4x2x64xf32, #tpu.memory_space<vmem>>, vector<1x1x2x64xf32>
    %13 = vector.shape_cast %12 : vector<1x1x2x64xf32> to vector<2x64xf32>
    %cst = arith.constant dense<0.000000e+00> : vector<2x64xf32>
    %14 = tpu.matmul %5, %4, %cst {dimension_numbers = #tpu.dot_dimension_numbers<[1], [0], [0], [1], [0, 0, 1, 1], [], []>} : vector<2x16xf32>, vector<16x64xf32>, vector<2x64xf32> -> vector<2x64xf32>
    %15 = arith.addf %13, %14 : vector<2x64xf32>
    %16 = vector.extract_strided_slice %15 {offsets = [0, 0], sizes = [2, 16], strides = [1, 1]} : vector<2x64xf32> to vector<2x16xf32>
    %17 = arith.negf %16 : vector<2x16xf32>
    %18 = math.exp %17 : vector<2x16xf32>
    %cst_11 = arith.constant 1.000000e+00 : f32
    %19 = vector.broadcast %cst_11 : f32 to vector<2x16xf32>
    %20 = arith.addf %19, %18 : vector<2x16xf32>
    %21 = arith.divf %19, %20 : vector<2x16xf32>
    %22 = vector.extract_strided_slice %15 {offsets = [0, 16], sizes = [2, 16], strides = [1, 1]} : vector<2x64xf32> to vector<2x16xf32>
    %23 = arith.negf %22 : vector<2x16xf32>
    %24 = math.exp %23 : vector<2x16xf32>
    %cst_12 = arith.constant 1.000000e+00 : f32
    %25 = vector.broadcast %cst_12 : f32 to vector<2x16xf32>
    %26 = arith.addf %25, %24 : vector<2x16xf32>
    %27 = arith.divf %25, %26 : vector<2x16xf32>
    %28 = vector.extract_strided_slice %15 {offsets = [0, 32], sizes = [2, 16], strides = [1, 1]} : vector<2x64xf32> to vector<2x16xf32>
    %29 = math.tanh %28 : vector<2x16xf32>
    %30 = vector.extract_strided_slice %15 {offsets = [0, 48], sizes = [2, 16], strides = [1, 1]} : vector<2x64xf32> to vector<2x16xf32>
    %31 = arith.negf %30 : vector<2x16xf32>
    %32 = math.exp %31 : vector<2x16xf32>
    %cst_13 = arith.constant 1.000000e+00 : f32
    %33 = vector.broadcast %cst_13 : f32 to vector<2x16xf32>
    %34 = arith.addf %33, %32 : vector<2x16xf32>
    %35 = arith.divf %33, %34 : vector<2x16xf32>
    %36 = arith.mulf %27, %6 : vector<2x16xf32>
    %37 = arith.mulf %21, %29 : vector<2x16xf32>
    %38 = arith.addf %36, %37 : vector<2x16xf32>
    %39 = math.tanh %38 : vector<2x16xf32>
    %40 = arith.mulf %35, %39 : vector<2x16xf32>
    %41 = arith.index_cast %10 : i32 to index
    %c0_14 = arith.constant 0 : index
    %c0_15 = arith.constant 0 : index
    %42 = vector.load %arg3[%41, %c0_14, %c0_15] : memref<4x2x1xf32, #tpu.memory_space<vmem>>, vector<1x2x1xf32>
    %43 = vector.shape_cast %42 : vector<1x2x1xf32> to vector<2x1xf32>
    %44 = vector.broadcast %43 : vector<2x1xf32> to vector<2x16xf32>
    %45 = arith.mulf %40, %44 : vector<2x16xf32>
    %c0_16 = arith.constant 0 : index
    %46 = arith.index_cast %10 : i32 to index
    %c0_17 = arith.constant 0 : index
    %c0_18 = arith.constant 0 : index
    %47 = vector.load %arg5[%c0_16, %46, %c0_17, %c0_18] : memref<1x4x2x16xf32, #tpu.memory_space<vmem>>, vector<1x1x2x16xf32>
    %48 = vector.shape_cast %47 : vector<1x1x2x16xf32> to vector<2x16xf32>
    %49 = vector.shape_cast %45 : vector<2x16xf32> to vector<1x1x2x16xf32>
    tpu.vector_store %arg5[%c0_16, %46, %c0_17, %c0_18], %49 {strides = array<i32>} : memref<1x4x2x16xf32, #tpu.memory_space<vmem>>, vector<1x1x2x16xf32>,
    %50 = arith.subf %40, %5 : vector<2x16xf32>
    %51 = vector.broadcast %43 : vector<2x1xf32> to vector<2x16xf32>
    %52 = arith.mulf %51, %50 : vector<2x16xf32>
    %53 = arith.addf %5, %52 : vector<2x16xf32>
    %54 = arith.subf %38, %6 : vector<2x16xf32>
    %55 = vector.broadcast %43 : vector<2x1xf32> to vector<2x16xf32>
    %56 = arith.mulf %55, %54 : vector<2x16xf32>
    %57 = arith.addf %6, %56 : vector<2x16xf32>
    %c1_i32 = arith.constant 1 : i32
    %c2_i32_19 = arith.constant 2 : i32
    %58 = arith.muli %c2_i32_19, %c1_i32 : i32
    %c3_i32_20 = arith.constant 3 : i32
    %59 = arith.subi %c3_i32_20, %58 : i32
    %60 = arith.muli %arg0, %59 : i32
    %61 = arith.addi %c1_i32, %60 : i32
    %c0_21 = arith.constant 0 : index
    %62 = arith.index_cast %61 : i32 to index
    %c0_22 = arith.constant 0 : index
    %c0_23 = arith.constant 0 : index
    %63 = vector.load %arg2[%c0_21, %62, %c0_22, %c0_23] : memref<1x4x2x64xf32, #tpu.memory_space<vmem>>, vector<1x1x2x64xf32>
    %64 = vector.shape_cast %63 : vector<1x1x2x64xf32> to vector<2x64xf32>
    %cst_24 = arith.constant dense<0.000000e+00> : vector<2x64xf32>
    %65 = tpu.matmul %53, %4, %cst_24 {dimension_numbers = #tpu.dot_dimension_numbers<[1], [0], [0], [1], [0, 0, 1, 1], [], []>} : vector<2x16xf32>, vector<16x64xf32>, vector<2x64xf32> -> vector<2x64xf32>
    %66 = arith.addf %64, %65 : vector<2x64xf32>
    %67 = vector.extract_strided_slice %66 {offsets = [0, 0], sizes = [2, 16], strides = [1, 1]} : vector<2x64xf32> to vector<2x16xf32>
    %68 = arith.negf %67 : vector<2x16xf32>
    %69 = math.exp %68 : vector<2x16xf32>
    %cst_25 = arith.constant 1.000000e+00 : f32
    %70 = vector.broadcast %cst_25 : f32 to vector<2x16xf32>
    %71 = arith.addf %70, %69 : vector<2x16xf32>
    %72 = arith.divf %70, %71 : vector<2x16xf32>
    %73 = vector.extract_strided_slice %66 {offsets = [0, 16], sizes = [2, 16], strides = [1, 1]} : vector<2x64xf32> to vector<2x16xf32>
    %74 = arith.negf %73 : vector<2x16xf32>
    %75 = math.exp %74 : vector<2x16xf32>
    %cst_26 = arith.constant 1.000000e+00 : f32
    %76 = vector.broadcast %cst_26 : f32 to vector<2x16xf32>
    %77 = arith.addf %76, %75 : vector<2x16xf32>
    %78 = arith.divf %76, %77 : vector<2x16xf32>
    %79 = vector.extract_strided_slice %66 {offsets = [0, 32], sizes = [2, 16], strides = [1, 1]} : vector<2x64xf32> to vector<2x16xf32>
    %80 = math.tanh %79 : vector<2x16xf32>
    %81 = vector.extract_strided_slice %66 {offsets = [0, 48], sizes = [2, 16], strides = [1, 1]} : vector<2x64xf32> to vector<2x16xf32>
    %82 = arith.negf %81 : vector<2x16xf32>
    %83 = math.exp %82 : vector<2x16xf32>
    %cst_27 = arith.constant 1.000000e+00 : f32
    %84 = vector.broadcast %cst_27 : f32 to vector<2x16xf32>
    %85 = arith.addf %84, %83 : vector<2x16xf32>
    %86 = arith.divf %84, %85 : vector<2x16xf32>
    %87 = arith.mulf %78, %57 : vector<2x16xf32>
    %88 = arith.mulf %72, %80 : vector<2x16xf32>
    %89 = arith.addf %87, %88 : vector<2x16xf32>
    %90 = math.tanh %89 : vector<2x16xf32>
    %91 = arith.mulf %86, %90 : vector<2x16xf32>
    %92 = arith.index_cast %61 : i32 to index
    %c0_28 = arith.constant 0 : index
    %c0_29 = arith.constant 0 : index
    %93 = vector.load %arg3[%92, %c0_28, %c0_29] : memref<4x2x1xf32, #tpu.memory_space<vmem>>, vector<1x2x1xf32>
    %94 = vector.shape_cast %93 : vector<1x2x1xf32> to vector<2x1xf32>
    %95 = vector.broadcast %94 : vector<2x1xf32> to vector<2x16xf32>
    %96 = arith.mulf %91, %95 : vector<2x16xf32>
    %c0_30 = arith.constant 0 : index
    %97 = arith.index_cast %61 : i32 to index
    %c0_31 = arith.constant 0 : index
    %c0_32 = arith.constant 0 : index
    %98 = vector.load %arg5[%c0_30, %97, %c0_31, %c0_32] : memref<1x4x2x16xf32, #tpu.memory_space<vmem>>, vector<1x1x2x16xf32>
    %99 = vector.shape_cast %98 : vector<1x1x2x16xf32> to vector<2x16xf32>
    %100 = vector.shape_cast %96 : vector<2x16xf32> to vector<1x1x2x16xf32>
    tpu.vector_store %arg5[%c0_30, %97, %c0_31, %c0_32], %100 {strides = array<i32>} : memref<1x4x2x16xf32, #tpu.memory_space<vmem>>, vector<1x1x2x16xf32>,
    %101 = arith.subf %91, %53 : vector<2x16xf32>
    %102 = vector.broadcast %94 : vector<2x1xf32> to vector<2x16xf32>
    %103 = arith.mulf %102, %101 : vector<2x16xf32>
    %104 = arith.addf %53, %103 : vector<2x16xf32>
    %105 = arith.subf %89, %57 : vector<2x16xf32>
    %106 = vector.broadcast %94 : vector<2x1xf32> to vector<2x16xf32>
    %107 = arith.mulf %106, %105 : vector<2x16xf32>
    %108 = arith.addf %57, %107 : vector<2x16xf32>
    %c2_i32_33 = arith.constant 2 : i32
    %c2_i32_34 = arith.constant 2 : i32
    %109 = arith.muli %c2_i32_34, %c2_i32_33 : i32
    %c3_i32_35 = arith.constant 3 : i32
    %110 = arith.subi %c3_i32_35, %109 : i32
    %111 = arith.muli %arg0, %110 : i32
    %112 = arith.addi %c2_i32_33, %111 : i32
    %c0_36 = arith.constant 0 : index
    %113 = arith.index_cast %112 : i32 to index
    %c0_37 = arith.constant 0 : index
    %c0_38 = arith.constant 0 : index
    %114 = vector.load %arg2[%c0_36, %113, %c0_37, %c0_38] : memref<1x4x2x64xf32, #tpu.memory_space<vmem>>, vector<1x1x2x64xf32>
    %115 = vector.shape_cast %114 : vector<1x1x2x64xf32> to vector<2x64xf32>
    %cst_39 = arith.constant dense<0.000000e+00> : vector<2x64xf32>
    %116 = tpu.matmul %104, %4, %cst_39 {dimension_numbers = #tpu.dot_dimension_numbers<[1], [0], [0], [1], [0, 0, 1, 1], [], []>} : vector<2x16xf32>, vector<16x64xf32>, vector<2x64xf32> -> vector<2x64xf32>
    %117 = arith.addf %115, %116 : vector<2x64xf32>
    %118 = vector.extract_strided_slice %117 {offsets = [0, 0], sizes = [2, 16], strides = [1, 1]} : vector<2x64xf32> to vector<2x16xf32>
    %119 = arith.negf %118 : vector<2x16xf32>
    %120 = math.exp %119 : vector<2x16xf32>
    %cst_40 = arith.constant 1.000000e+00 : f32
    %121 = vector.broadcast %cst_40 : f32 to vector<2x16xf32>
    %122 = arith.addf %121, %120 : vector<2x16xf32>
    %123 = arith.divf %121, %122 : vector<2x16xf32>
    %124 = vector.extract_strided_slice %117 {offsets = [0, 16], sizes = [2, 16], strides = [1, 1]} : vector<2x64xf32> to vector<2x16xf32>
    %125 = arith.negf %124 : vector<2x16xf32>
    %126 = math.exp %125 : vector<2x16xf32>
    %cst_41 = arith.constant 1.000000e+00 : f32
    %127 = vector.broadcast %cst_41 : f32 to vector<2x16xf32>
    %128 = arith.addf %127, %126 : vector<2x16xf32>
    %129 = arith.divf %127, %128 : vector<2x16xf32>
    %130 = vector.extract_strided_slice %117 {offsets = [0, 32], sizes = [2, 16], strides = [1, 1]} : vector<2x64xf32> to vector<2x16xf32>
    %131 = math.tanh %130 : vector<2x16xf32>
    %132 = vector.extract_strided_slice %117 {offsets = [0, 48], sizes = [2, 16], strides = [1, 1]} : vector<2x64xf32> to vector<2x16xf32>
    %133 = arith.negf %132 : vector<2x16xf32>
    %134 = math.exp %133 : vector<2x16xf32>
    %cst_42 = arith.constant 1.000000e+00 : f32
    %135 = vector.broadcast %cst_42 : f32 to vector<2x16xf32>
    %136 = arith.addf %135, %134 : vector<2x16xf32>
    %137 = arith.divf %135, %136 : vector<2x16xf32>
    %138 = arith.mulf %129, %108 : vector<2x16xf32>
    %139 = arith.mulf %123, %131 : vector<2x16xf32>
    %140 = arith.addf %138, %139 : vector<2x16xf32>
    %141 = math.tanh %140 : vector<2x16xf32>
    %142 = arith.mulf %137, %141 : vector<2x16xf32>
    %143 = arith.index_cast %112 : i32 to index
    %c0_43 = arith.constant 0 : index
    %c0_44 = arith.constant 0 : index
    %144 = vector.load %arg3[%143, %c0_43, %c0_44] : memref<4x2x1xf32, #tpu.memory_space<vmem>>, vector<1x2x1xf32>
    %145 = vector.shape_cast %144 : vector<1x2x1xf32> to vector<2x1xf32>
    %146 = vector.broadcast %145 : vector<2x1xf32> to vector<2x16xf32>
    %147 = arith.mulf %142, %146 : vector<2x16xf32>
    %c0_45 = arith.constant 0 : index
    %148 = arith.index_cast %112 : i32 to index
    %c0_46 = arith.constant 0 : index
    %c0_47 = arith.constant 0 : index
    %149 = vector.load %arg5[%c0_45, %148, %c0_46, %c0_47] : memref<1x4x2x16xf32, #tpu.memory_space<vmem>>, vector<1x1x2x16xf32>
    %150 = vector.shape_cast %149 : vector<1x1x2x16xf32> to vector<2x16xf32>
    %151 = vector.shape_cast %147 : vector<2x16xf32> to vector<1x1x2x16xf32>
    tpu.vector_store %arg5[%c0_45, %148, %c0_46, %c0_47], %151 {strides = array<i32>} : memref<1x4x2x16xf32, #tpu.memory_space<vmem>>, vector<1x1x2x16xf32>,
    %152 = arith.subf %142, %104 : vector<2x16xf32>
    %153 = vector.broadcast %145 : vector<2x1xf32> to vector<2x16xf32>
    %154 = arith.mulf %153, %152 : vector<2x16xf32>
    %155 = arith.addf %104, %154 : vector<2x16xf32>
    %156 = arith.subf %140, %108 : vector<2x16xf32>
    %157 = vector.broadcast %145 : vector<2x1xf32> to vector<2x16xf32>
    %158 = arith.mulf %157, %156 : vector<2x16xf32>
    %159 = arith.addf %108, %158 : vector<2x16xf32>
    %c3_i32_48 = arith.constant 3 : i32
    %c2_i32_49 = arith.constant 2 : i32
    %160 = arith.muli %c2_i32_49, %c3_i32_48 : i32
    %c3_i32_50 = arith.constant 3 : i32
    %161 = arith.subi %c3_i32_50, %160 : i32
    %162 = arith.muli %arg0, %161 : i32
    %163 = arith.addi %c3_i32_48, %162 : i32
    %c0_51 = arith.constant 0 : index
    %164 = arith.index_cast %163 : i32 to index
    %c0_52 = arith.constant 0 : index
    %c0_53 = arith.constant 0 : index
    %165 = vector.load %arg2[%c0_51, %164, %c0_52, %c0_53] : memref<1x4x2x64xf32, #tpu.memory_space<vmem>>, vector<1x1x2x64xf32>
    %166 = vector.shape_cast %165 : vector<1x1x2x64xf32> to vector<2x64xf32>
    %cst_54 = arith.constant dense<0.000000e+00> : vector<2x64xf32>
    %167 = tpu.matmul %155, %4, %cst_54 {dimension_numbers = #tpu.dot_dimension_numbers<[1], [0], [0], [1], [0, 0, 1, 1], [], []>} : vector<2x16xf32>, vector<16x64xf32>, vector<2x64xf32> -> vector<2x64xf32>
    %168 = arith.addf %166, %167 : vector<2x64xf32>
    %169 = vector.extract_strided_slice %168 {offsets = [0, 0], sizes = [2, 16], strides = [1, 1]} : vector<2x64xf32> to vector<2x16xf32>
    %170 = arith.negf %169 : vector<2x16xf32>
    %171 = math.exp %170 : vector<2x16xf32>
    %cst_55 = arith.constant 1.000000e+00 : f32
    %172 = vector.broadcast %cst_55 : f32 to vector<2x16xf32>
    %173 = arith.addf %172, %171 : vector<2x16xf32>
    %174 = arith.divf %172, %173 : vector<2x16xf32>
    %175 = vector.extract_strided_slice %168 {offsets = [0, 16], sizes = [2, 16], strides = [1, 1]} : vector<2x64xf32> to vector<2x16xf32>
    %176 = arith.negf %175 : vector<2x16xf32>
    %177 = math.exp %176 : vector<2x16xf32>
    %cst_56 = arith.constant 1.000000e+00 : f32
    %178 = vector.broadcast %cst_56 : f32 to vector<2x16xf32>
    %179 = arith.addf %178, %177 : vector<2x16xf32>
    %180 = arith.divf %178, %179 : vector<2x16xf32>
    %181 = vector.extract_strided_slice %168 {offsets = [0, 32], sizes = [2, 16], strides = [1, 1]} : vector<2x64xf32> to vector<2x16xf32>
    %182 = math.tanh %181 : vector<2x16xf32>
    %183 = vector.extract_strided_slice %168 {offsets = [0, 48], sizes = [2, 16], strides = [1, 1]} : vector<2x64xf32> to vector<2x16xf32>
    %184 = arith.negf %183 : vector<2x16xf32>
    %185 = math.exp %184 : vector<2x16xf32>
    %cst_57 = arith.constant 1.000000e+00 : f32
    %186 = vector.broadcast %cst_57 : f32 to vector<2x16xf32>
    %187 = arith.addf %186, %185 : vector<2x16xf32>
    %188 = arith.divf %186, %187 : vector<2x16xf32>
    %189 = arith.mulf %180, %159 : vector<2x16xf32>
    %190 = arith.mulf %174, %182 : vector<2x16xf32>
    %191 = arith.addf %189, %190 : vector<2x16xf32>
    %192 = math.tanh %191 : vector<2x16xf32>
    %193 = arith.mulf %188, %192 : vector<2x16xf32>
    %194 = arith.index_cast %163 : i32 to index
    %c0_58 = arith.constant 0 : index
    %c0_59 = arith.constant 0 : index
    %195 = vector.load %arg3[%194, %c0_58, %c0_59] : memref<4x2x1xf32, #tpu.memory_space<vmem>>, vector<1x2x1xf32>
    %196 = vector.shape_cast %195 : vector<1x2x1xf32> to vector<2x1xf32>
    %197 = vector.broadcast %196 : vector<2x1xf32> to vector<2x16xf32>
    %198 = arith.mulf %193, %197 : vector<2x16xf32>
    %c0_60 = arith.constant 0 : index
    %199 = arith.index_cast %163 : i32 to index
    %c0_61 = arith.constant 0 : index
    %c0_62 = arith.constant 0 : index
    %200 = vector.load %arg5[%c0_60, %199, %c0_61, %c0_62] : memref<1x4x2x16xf32, #tpu.memory_space<vmem>>, vector<1x1x2x16xf32>
    %201 = vector.shape_cast %200 : vector<1x1x2x16xf32> to vector<2x16xf32>
    %202 = vector.shape_cast %198 : vector<2x16xf32> to vector<1x1x2x16xf32>
    tpu.vector_store %arg5[%c0_60, %199, %c0_61, %c0_62], %202 {strides = array<i32>} : memref<1x4x2x16xf32, #tpu.memory_space<vmem>>, vector<1x1x2x16xf32>,
    %203 = arith.subf %193, %155 : vector<2x16xf32>
    %204 = vector.broadcast %196 : vector<2x1xf32> to vector<2x16xf32>
    %205 = arith.mulf %204, %203 : vector<2x16xf32>
    %206 = arith.addf %155, %205 : vector<2x16xf32>
    %207 = arith.subf %191, %159 : vector<2x16xf32>
    %208 = vector.broadcast %196 : vector<2x1xf32> to vector<2x16xf32>
    %209 = arith.mulf %208, %207 : vector<2x16xf32>
    %210 = arith.addf %159, %209 : vector<2x16xf32>
    %c4_i32 = arith.constant 4 : i32
    %c0_63 = arith.constant 0 : index
    %c0_64 = arith.constant 0 : index
    %211 = vector.load %arg6[%c0_63, %c0_64] : memref<2x16xf32, #tpu.memory_space<vmem>>, vector<2x16xf32>
    tpu.vector_store %arg6[%c0_63, %c0_64], %206 {strides = array<i32>} : memref<2x16xf32, #tpu.memory_space<vmem>>, vector<2x16xf32>,
    %c0_65 = arith.constant 0 : index
    %c0_66 = arith.constant 0 : index
    %212 = vector.load %arg7[%c0_65, %c0_66] : memref<2x16xf32, #tpu.memory_space<vmem>>, vector<2x16xf32>
    tpu.vector_store %arg7[%c0_65, %c0_66], %210 {strides = array<i32>} : memref<2x16xf32, #tpu.memory_space<vmem>>, vector<2x16xf32>,
    return
  }
  func.func @transform_0(%arg0: i32, %arg1: i32) -> (i32, i32, i32, i32) {
    %c2_i32 = arith.constant 2 : i32
    %0 = arith.muli %c2_i32, %arg1 : i32
    %c2_i32_0 = arith.constant 2 : i32
    %1 = arith.subi %c2_i32_0, %0 : i32
    %2 = arith.muli %arg0, %1 : i32
    %3 = arith.addi %arg1, %2 : i32
    %c0_i32 = arith.constant 0 : i32
    %c0_i32_1 = arith.constant 0 : i32
    %c0_i32_2 = arith.constant 0 : i32
    return %arg0, %3, %c0_i32, %c0_i32_1 : i32, i32, i32, i32
  }
  func.func @transform_1(%arg0: i32, %arg1: i32) -> (i32, i32, i32) {
    %c2_i32 = arith.constant 2 : i32
    %0 = arith.muli %c2_i32, %arg1 : i32
    %c2_i32_0 = arith.constant 2 : i32
    %1 = arith.subi %c2_i32_0, %0 : i32
    %2 = arith.muli %arg0, %1 : i32
    %3 = arith.addi %arg1, %2 : i32
    %c0_i32 = arith.constant 0 : i32
    %c0_i32_1 = arith.constant 0 : i32
    %c0_i32_2 = arith.constant 0 : i32
    return %3, %c0_i32, %c0_i32_1 : i32, i32, i32
  }
  func.func @transform_2(%arg0: i32, %arg1: i32) -> (i32, i32, i32) {
    %c0_i32 = arith.constant 0 : i32
    %c0_i32_0 = arith.constant 0 : i32
    %c0_i32_1 = arith.constant 0 : i32
    return %arg0, %c0_i32, %c0_i32_0 : i32, i32, i32
  }
  func.func @transform_3(%arg0: i32, %arg1: i32) -> (i32, i32, i32, i32) {
    %c2_i32 = arith.constant 2 : i32
    %0 = arith.muli %c2_i32, %arg1 : i32
    %c2_i32_0 = arith.constant 2 : i32
    %1 = arith.subi %c2_i32_0, %0 : i32
    %2 = arith.muli %arg0, %1 : i32
    %3 = arith.addi %arg1, %2 : i32
    %c0_i32 = arith.constant 0 : i32
    %c0_i32_1 = arith.constant 0 : i32
    %c0_i32_2 = arith.constant 0 : i32
    return %arg0, %3, %c0_i32, %c0_i32_1 : i32, i32, i32, i32
  }
}

</mosaic_0001>

<bundles_post_ra>
// kernel: encoder_forward.2
= control target key start
LH: loop header
LB: loop body
LE: loop exit
PB: predicated region body
PF: predicated region fallthrough
CT: control target
= control target key end

     0   :  { %s713_s15 = smov 0   ;;  %s715_s16 = smov 0   ;;  %s815_s0 = inlined_call_operand.vmem [shape: f32[24,48], index: 0, kind: input, shape index: {}]   ;;  %s816_s1 = inlined_call_operand.vmem [shape: f32[48,32], index: 1, kind: input, shape index: {}]   ;;  %s817_s2 = inlined_call_operand.vmem [shape: f32[2,32,64], index: 2, kind: input, shape index: {}]   ;;  %s818_s3 = inlined_call_operand.vmem [shape: f32[2,1,64], index: 3, kind: input, shape index: {}]   ;;  %s819_s4 = inlined_call_operand.vmem [shape: f32[2,24,64], index: 4, kind: output, shape index: {}]  }
   0x1   :  { %s717_s17 = smov 0  }
   0x2 LB: > { %s726_s18 = sadd.s32 4294967295, %s683_s17   ;;  %s728_s19 = sadd.s32 1, %s683_s17   ;;  %s683_s17 = sphi %s717_s17, %s823_s17   ;;  %s679_s16 = sphi %s715_s16, %s822_s16   ;;  %s675_s15 = sphi %s713_s15, %s821_s15  }
   0x3   : > { %s107_s20 = ssub.s32 %s683_s17, %s728_s19  ;;  %s110_s21 = sadd.s32 1, %s679_s16 }
   0x4   : > { %p108_p0 = scmp.eq.s32.totalorder %s107_s20, 0  ;;  %p120_p1 = scmp.ne.s32.totalorder %s679_s16, %s675_s15 }
   0x5   : > { %p121_p2 = scmp.eq.s32.totalorder %s726_s18, 2  ;;  %p541_p3 = scmp.ge.s32.totalorder %s683_s17, 1 }
   0x6   : > { %s736_s22 = scalar_select %p108_p0, %s679_s16, %s110_s21  }
   0x7   : > { %p738_p4 = por %p121_p2, %p120_p1  ;;  %p161_p5 = scmp.lt.s32.totalorder %s683_s17, 4 }
   0x9   : > { %p162_p6 = pnand %p541_p3, %p161_p5 }
   0xa   : > { %v190_v0 = vld [vmem:[%s816_s1] sm:$0xff] (!%p162_p6)  ;;  %v191_v1 = vld [vmem:[%s816_s1 + $0x8] sm:$0xff] (!%p162_p6)  ;;  %v192_v2 = vld [vmem:[%s816_s1 + $0x10] sm:$0xff] (!%p162_p6)  ;;  %v685_v3 = vmov (!%p162_p6), 0.0|0.0   ;;  %vm686_vm0 = vmmov (!%p162_p6), 0   ;;  %v687_v6 = vmov (!%p162_p6), 0.0  }
   0xb   : > { %165 = sbr.rel (%p162_p6) target bundleno = 467 (0x1d3), region = 36  ;;  %613 = vmatprep.subr.bf16.mxu0 (!%p162_p6), %v685_v3  ;;  %v614_v4 = vpack.c.bf16 (!%p162_p6), %v191_v1, %v190_v0  ;;  %v193_v5 = vld [vmem:[%s816_s1 + $0x18] sm:$0xff] (!%p162_p6)  ;;  %588 = vmatprep.mubr.msk.f32.mxu0 (!%p162_p6), %vm686_vm0, %v687_v6  ;;  %p185_p7 = scmp.lt.s32.totalorder (!%p162_p6), %s726_s18, 2  ;;  %v270_v7 = vld [vmem:[%s817_s2] sm:$0xff] (!%p162_p6)  ;;  %v271_v8 = vld [vmem:[%s817_s2 + $0x8] sm:$0xff] (!%p162_p6)  ;;  %vm196_vm1 = vcmask (!%p162_p6), 392192  }
   0xc   : > { %622 = vmatprep.subr.bf16.mxu1 (!%p162_p6), %v685_v3  ;;  %v272_v9 = vld [vmem:[%s817_s2 + $0x10] sm:$0xff] (!%p162_p6)  ;;  %599 = vmatprep.mubr.msk.f32.mxu1 (!%p162_p6), %vm686_vm0, %v687_v6  ;;  %v617_v10 = vpack.c.bf16 (!%p162_p6), %v193_v5, %v192_v2  ;;  %v623_v11 = vpack.c.bf16 (!%p162_p6), %v271_v8, %v270_v7  ;;  %v273_v12 = vld [vmem:[%s817_s2 + $0x18] sm:$0xff] (!%p162_p6)  ;;  %v194_v13 = vld [vmem:[%s816_s1 + $0x20] sm:$0xff] (!%p162_p6)  ;;  %vm281_vm2 = vcmask (!%p162_p6), 261120   ;;  %s182_s11 = sand.u32 (!%p162_p6), 1, %s675_s15   ;;  %vm355_vm3 = vcmask (!%p162_p6), 523264  }
   0xd   : > { %615 = vmatpush3.bf16.msra.mxu0 (!%p162_p6), %v614_v4  ;;  %v195_v14 = vld [vmem:[%s816_s1 + $0x28] sm:$0xff] (!%p162_p6)  ;;  %v626_v15 = vpack.c.bf16 (!%p162_p6), %v273_v12, %v272_v9  ;;  %v547_v18 = vld [vmem:[%s817_s2 + $0x20] sm:$0xff] (!%p162_p6)  ;;  %v549_v21 = vld [vmem:[%s817_s2 + $0x30] sm:$0xff] (!%p162_p6) }
   0xe   : > { %616 = vmatprep.subr.bf16.mxu0 (!%p162_p6), %v685_v3  ;;  %624 = vmatpush3.bf16.msra.mxu1 (!%p162_p6), %v623_v11  ;;  %v620_v16 = vpack.c.bf16 (!%p162_p6), %v195_v14, %v194_v13  ;;  %v548_v19 = vld [vmem:[%s817_s2 + $0x28] sm:$0xff] (!%p162_p6)  ;;  %v550_v22 = vld [vmem:[%s817_s2 + $0x38] sm:$0xff] (!%p162_p6)  ;;  %v545_v26 = vld [vmem:[%s818_s3] ss:$0 sm:$0xff] (!%p162_p6) }
   0xf   : > { %625 = vmatprep.subr.bf16.mxu1 (!%p162_p6), %v685_v3  ;;  %v629_v20 = vpack.c.bf16 (!%p162_p6), %v548_v19, %v547_v18  ;;  %v632_v25 = vpack.c.bf16 (!%p162_p6), %v550_v22, %v549_v21  ;;  %v552_v30 = vld [vmem:[%s818_s3 + $0x1] ss:$0 sm:$0xff] (!%p162_p6) }
  0x11   : > { %618 = vmatpush3.bf16.msra.mxu0 (!%p162_p6), %v617_v10 }
  0x12   : > { %s186_s12 = scalar_select %p185_p7, %s726_s18, 2  ;;  %619 = vmatprep.subr.bf16.mxu0 %v685_v3  ;;  %627 = vmatpush3.bf16.msra.mxu1 %v626_v15 }
  0x13   : > { %628 = vmatprep.subr.bf16.mxu1 %v685_v3  ;;  %s556_s15 = sshll.u32 (%p738_p4), %s726_s18, 3 }
  0x14   : > { %s543_s25 = sshll.u32 %s186_s12, 3  ;;  %s542_s12 = sshll.u32 %s182_s11, 4 }
  0x15   : > { %s188_s28 = scalar_lea.vmem %s815_s0, %s543_s25  ;;  %621 = vmatpush3.bf16.msra.mxu0 %v620_v16  ;;  %s184_s17 = scalar_lea.vmem [#allocation2], %s542_s12 }
  0x16   : > { %v189_v17 = vld [vmem:[%s188_s28] sm:$0xff]  ;;  %s450_s26 = scalar_lea.vmem (%p738_p4), %s819_s4, %s556_s15 }
  0x18   : > { %589 = vmatmul.mubr.msk.f32.vlgmr.msra.gmra.mrb[0].mxu0 %vm196_vm1, %v189_v17 }
  0xeb   : > { %v266_v23 = vpop.f32.mrb[0].mxu0 }
  0xec   : > { %v590_v24 = vpop.f32.mrb[1].mxu0  ;;  %600 = vmatmul.mubr.msk.f32.vlgmr.msra.gmra.mrb[0].mxu1 %vm281_vm2, %v266_v23 }
  0xed   : > { %630 = vmatpush3.bf16.msra.mxu1 %v629_v20  ;;  %610 = vmatprep.mubr.msk.f32.mxu1 %vm686_vm0, %v687_v6 }
  0xee   : > { %631 = vmatprep.subr.bf16.mxu1 %v685_v3 }
  0xf1   : > { %633 = vmatpush3.bf16.msra.mxu1 %v632_v25 }
  0xf4   : > { %611 = vmatmul.mubr.msk.f32.vlgmr.msra.gmra.mrb[2].mxu1 %vm281_vm2, %v266_v23 }
 0x1bf   : > { %v351_v27 = vpop.f32.mrb[0].mxu1 }
 0x1c0   : > { %v352_v28 = vadd.f32 %v545_v26, %v351_v27  ;;  %v601_v29 = vpop.f32.mrb[1].mxu1 }
 0x1c2   : > { %356 = vst.msk [vmem:[%s184_s17] sm:$0xff] %vm355_vm3, %v352_v28 }
 0x1c4   : > { %448 = sbr.rel (!%p738_p4) target bundleno = 467 (0x1d3), region = 40 }
 0x1c7   : > { %v436_v31 = vpop.f32.mrb[2].mxu1 }
 0x1c8   : > { %v437_v32 = vadd.f32 %v552_v30, %v436_v31  ;;  %v612_v33 = vpop.f32.mrb[3].mxu1 }
 0x1c9   : > { %v480_v34 = vld [vmem:[%s184_s17] sm:$0xff] (%p738_p4) }
 0x1ca   : > { %554 = vst.msk [vmem:[%s184_s17 + $0x8] sm:$0xff] %vm355_vm3, %v437_v32  ;;  %481 = vst [vmem:[%s450_s26] sm:$0xff] (%p738_p4), %v480_v34 }
 0x1d1   : > { %v482_v35 = vld [vmem:[%s184_s17 + $0x8] sm:$0xff] }
 0x1d2   : > { %483 = vst [vmem:[%s450_s26 + $0x18] sm:$0xff] %v482_v35 }
 0x1d3 PF: > { %p11_p8 = scmp.ge.s32.totalorder %s728_s19, 5   ;;  %s821_s15 = smov %s679_s16 }
 0x1d4   : > { %s822_s16 = smov %s736_s22  ;;  %s823_s17 = smov %s728_s19 }
 0x1d5   :  { %13 = sbr.rel (!%p11_p8) target bundleno = 2 (0x2), region = 107 }

// kernel: encoder_forward.3
= control target key start
LH: loop header
LB: loop body
LE: loop exit
PB: predicated region body
PF: predicated region fallthrough
CT: control target
= control target key end

     0   :  { %s1308_s12 = smov 0   ;;  %s1310_s13 = smov 0   ;;  %s1497_s0 = inlined_call_operand.vmem [shape: f32[2,12,2,64], index: 0, kind: input, shape index: {}]   ;;  %s1498_s1 = inlined_call_operand.vmem [shape: f32[12,2,1], index: 1, kind: input, shape index: {}]   ;;  %s1499_s2 = inlined_call_operand.vmem [shape: f32[2,16,64], index: 2, kind: input, shape index: {}]   ;;  %s1500_s3 = inlined_call_operand.vmem [shape: f32[2,12,2,16], index: 3, kind: output, shape index: {}]  }
   0x1   :  { %s1312_s14 = smov 0   ;;  %s1314_s15 = smov 0  }
   0x2   :  { %s1316_s16 = smov 0  }
   0x3 LB: > { %s22_s17 = sadd.s32 1, %s1267_s14  ;;  %s25_s18 = sadd.s32 1, %s1271_s15  ;;  %s1275_s16 = sphi %s1316_s16, %s13_s16   ;;  %s1271_s15 = sphi %s1314_s15, %s1504_s15   ;;  %s1267_s14 = sphi %s1312_s14, %s1503_s14   ;;  %s1263_s13 = sphi %s1310_s13, %s1502_s13   ;;  %s1259_s12 = sphi %s1308_s12, %s1501_s12  }
   0x4   : > { %p23_p0 = scmp.ge.s32.totalorder %s22_s17, 3  ;;  %p1061_p1 = scmp.ge.s32.totalorder %s1275_s16, 1 }
   0x5   : > { %p219_p2 = scmp.lt.s32.totalorder %s1275_s16, 7 }
   0x6   : > { %s1506_s17 = smov (%p23_p0, %s22_s17), 0  ;;  %s1508_s18 = smov (!%p23_p0, %s25_s18), %s1271_s15 }
   0x7   : > { %p220_p3 = pnand %p1061_p1, %p219_p2  ;;  %p27_p4 = scmp.ge.s32.totalorder %s1508_s18, 2 }
   0x8   : > { %s1062_s19 = sshll.u32 (!%p220_p3), %s1259_s12, 1  ;;  %p278_p5 = scmp.lt.s32.totalorder (!%p220_p3), %s1263_s13, 1 }
   0x9   : > { %s1510_s18 = smov (%p27_p4, %s1508_s18), 0  ;;  %223 = sbr.rel (%p220_p3) target bundleno = 2866 (0xb32), region = 32 }
   0xa   : > { %s274_s20 = ssub.s32 (!%p220_p3), 2, %s1062_s19  ;;  %p1073_p7 = scmp.ne.s32.totalorder (!%p220_p3), %s1259_s12, 0 }
   0xb   : > { %s275_s21 = smul.u32 (!%p220_p3), %s1263_s13, %s274_s20 }
   0xd   : > { %s276_s23 = sadd.s32 (!%p220_p3), %s1259_s12, %s275_s21 }
   0xe   : > { %s1063_s24 = sshll.u32 (!%p220_p3), %s276_s23, 2 }
   0xf   : > { %p280_p6 = scmp.lt.s32.totalorder (!%p220_p3), %s1063_s24, 11 }
  0x10   : > { %s279_s22 = scalar_select %p278_p5, %s1263_s13, 1 }
  0x11   : > { %s1512_s24 = smov (!%p280_p6, %s1063_s24), 11  ;;  %331 = sbr.rel (%p1073_p7) target bundleno = 24 (0x18), region = 36 }
  0x12   : > { %s1151_s25 = smul.u32 12, %s279_s22  ;;  %s1098_s26 = sshll.u32 %s279_s22, 4  ;;  %vm332_vm0 = vcmask (!%p1073_p7), 123904   ;;  %v1277_v0 = vmov (!%p1073_p7), 0.0  }
  0x13   : > { %s309_s29 = scalar_lea.vmem %s1499_s2, %s1098_s26  ;;  %s1067_s4 = sshll.u32 %s1512_s24, 1  ;;  %333 = vst.msk [vmem:[#allocation2] sm:$0x3] (!%p1073_p7), %vm332_vm0, %v1277_v0  ;;  %334 = vst.msk [vmem:[#allocation3] sm:$0x3] (!%p1073_p7), %vm332_vm0, %v1277_v0 }
  0x14   : > { %s283_s30 = sadd.s32 %s1151_s25, %s1512_s24  ;;  %s1353_s8 = scalar_lea.vmem %s1498_s1, %s1067_s4 }
  0x15   : > { %s1064_s5 = sshll.u32 %s283_s30, 1 }
  0x16   : > { %s1358_s11 = scalar_lea.vmem %s1497_s0, %s1064_s5  ;;  %s1363_s21 = scalar_lea.vmem %s1500_s3, %s1064_s5 }
  0x18 PF: > { %v335_v1 = vld [vmem:[%s309_s29] sm:$0xff]  ;;  %v336_v2 = vld [vmem:[%s309_s29 + $0x8] sm:$0xff]  ;;  %v1278_v3 = vmov 0.0|0.0   ;;  %vm1279_vm1 = vmmov 0   ;;  %v1280_v5 = vmov 0.0   ;;  %vm343_vm2 = vcmask 130048  }
  0x19   : > { %1139 = vmatprep.subr.bf16.mxu0 %v1278_v3  ;;  %v1366_v4 = vpack.c.bf16 %v336_v2, %v335_v1  ;;  %1115 = vmatprep.mubr.msk.f32.mxu0 %vm1279_vm1, %v1280_v5  ;;  %s1382_s12 = smul.u32 6, %s1263_s13  ;;  %v1281_v11 = vmov 0   ;;  %s1282_s23 = smov 96   ;;  %vm459_vm3 = vcmask 123904  }
  0x1a   : > { %1142 = vmatprep.subr.bf16.mxu1 %v1278_v3  ;;  %1122 = vmatprep.mubr.msk.f32.mxu1 %vm1279_vm1, %v1280_v5  ;;  %v1373_v6 = vld [vmem:[#allocation2] sm:$0x3]  ;;  %v338_v13 = vld [vmem:[#allocation3] sm:$0x3]  ;;  %s1283_s24 = smov 16   ;;  %s1284_s26 = smov 48  }
  0x1b   : > { %1141 = vmatpush3.bf16.msra.mxu0 %v1366_v4  ;;  %1144 = vmatpush3.bf16.msra.mxu1 %v1366_v4  ;;  %s341_s22 = scalar_lea.vmem %s1358_s11, %s1382_s12  ;;  %s446_s25 = scalar_lea.vmem %s1353_s8, %s1382_s12 }
  0x1c   : > { %1145 = vmatprep.subr.bf16.mxu0 %v1278_v3  ;;  %1148 = vmatprep.subr.bf16.mxu1 %v1278_v3  ;;  %v342_v7 = vld [vmem:[%s341_s22] sm:$0x3]  ;;  %s1285_s27 = smov 32   ;;  %s1286_s28 = smov 112  }
  0x1d   : > { %1203 = vset.pattern.permute.xlu1 %v1281_v11  ;;  %1204 = vset.pattern.permute.xlu0 %v1281_v11  ;;  %v447_v20 = vld [vmem:[%s446_s25] sm:$0x3]  ;;  %s1402_s29 = sshll.u32 %s1263_s13, 1  ;;  %s1287_s30 = smov 80  }
  0x1e   : > { %1116 = vmatmul.mubr.msk.f32.vlgmr.msra.gmra.mrb[0].mxu0 %vm343_vm2, %v1373_v6  ;;  %s976_s4 = scalar_lea.vmem %s1353_s8, %s1402_s29  ;;  %s973_s5 = scalar_lea.vmem %s1358_s11, %s1402_s29 }
  0x1f   : > { %1147 = vmatpush3.bf16.msra.mxu0 %v1366_v4  ;;  %1129 = vmatprep.mubr.msk.f32.mxu0 %vm1279_vm1, %v1280_v5  ;;  %v1082_v36 = vld [vmem:[%s976_s4 + $0x2] sm:$0x3]  ;;  %s615_s6 = ssub.s32 2, %s1263_s13  ;;  %s1444_s19 = smul.u32 4294967290, %s1263_s13 }
  0x20   : > { %v1078_v39 = vld [vmem:[%s973_s5 + $0x2] sm:$0x3]  ;;  %s1425_s7 = sshll.u32 %s615_s6, 1 }
  0x21   : > { %s721_s9 = scalar_lea.vmem %s1353_s8, %s1425_s7  ;;  %s617_s10 = scalar_lea.vmem %s1358_s11, %s1425_s7 }
  0x22   : > { %v722_v61 = vld [vmem:[%s721_s9] sm:$0x3]  ;;  %s993_s20 = scalar_lea.vmem %s1353_s8, %s1444_s19  ;;  %s989_s13 = scalar_lea.vmem %s1358_s11, %s1444_s19 }
  0x23   : > { %s458_s8 = scalar_lea.vmem %s1363_s21, %s1382_s12  ;;  %s979_s11 = scalar_lea.vmem %s1363_s21, %s1402_s29 }
  0x24   : > { %s733_s12 = scalar_lea.vmem %s1363_s21, %s1425_s7  ;;  %s997_s22 = scalar_lea.vmem %s1363_s21, %s1444_s19 }
  0xf1   : > { %v413_v8 = vpop.f32.mrb[0].mxu0 }
  0xf2   : > { %v417_v9 = vadd.f32 %v413_v8, %v342_v7  ;;  %v1117_v10 = vpop.f32.mrb[1].mxu0 }
  0xf4   : > { %1205 = vtanh.f32 %v417_v9  ;;  %v1076_v14 = vmul.f32 -1.442695, %v417_v9 }
  0xf6   : > { %1207 = vpow2.f32 %v1076_v14 }
  0xfe   : > { %v1206_v12 = vpop.eup %1205 }
  0xff   : > { %431 = vrot.lane.b32.xlu0 %v1206_v12, %s1282_s23 }
 0x100   : > { %v1208_v15 = vpop.eup %1207 }
 0x101   : > { %v421_v16 = vadd.f32 1.0, %v1208_v15 }
 0x103   : > { %426 = vrot.lane.b32.xlu0 %v338_v13, %s1283_s24  ;;  %1209 = vrcp.f32 %v421_v16 }
 0x10d   : > { %v1210_v17 = vpop.eup %1209 }
 0x171   : > { %v432_v18 = vpop.permute.xlu0 %431 }
 0x172   : > { %v434_v19 = vmul.f32 %v1210_v17, %v432_v18 }
 0x174   : > { %436 = vrot.lane.b32.xlu1 %v434_v19, %s1283_s24 }
 0x175   : > { %v427_v21 = vpop.permute.xlu0 %426 }
 0x176   : > { %v429_v22 = vmul.f32 %v1210_v17, %v427_v21 }
 0x178   : > { %450 = vperm.xlu1 %1203, %v447_v20  }
 0x17c   : > { %461 = vrot.lane.b32.xlu1 %v1373_v6, %s1284_s26 }
 0x1e6   : > { %v437_v23 = vpop.permute.xlu1 %436 }
 0x1e7   : > { %v439_v24 = vadd.f32 %v437_v23, %v429_v22 }
 0x1e9   : > { %1211 = vtanh.f32 %v439_v24  ;;  %v471_v26 = vsub.f32 %v439_v24, %v427_v21 }
 0x1f3   : > { %v1212_v25 = vpop.eup %1211 }
 0x1f4   : > { %442 = vrot.lane.b32.xlu0 %v1212_v25, %s1285_s27 }
 0x1f7   : > { %v1394_v27 = vpop.permute.xlu1 %450 }
 0x1f8   : > { %v472_v28 = vmul.f32 %v471_v26, %v1394_v27  ;;  %v1093_v26 = vld [vmem:[%s993_s20 + $0x6] sm:$0x3] }
 0x1fa   : > { %474 = vrot.lane.b32.xlu1 %v472_v28, %s1286_s28 }
 0x1fb   : > { %v462_v30 = vpop.permute.xlu1 %461 }
 0x266   : > { %v443_v29 = vpop.permute.xlu0 %442 }
 0x267   : > { %v1398_v31 = vmul.f32 %v1210_v17, %v443_v29 }
 0x269   : > { %v464_v32 = vsub.f32 %v1398_v31, %v462_v30 }
 0x26b   : > { %v465_v33 = vmul.f32 %v464_v32, %v1394_v27 }
 0x26c   : > { %v475_v34 = vpop.permute.xlu1 %474 }
 0x26d   : > { %v477_v35 = vadd.f32 %v475_v34, %v338_v13  ;;  %467 = vrot.lane.b32.xlu0 %v465_v33, %s1287_s30 }
 0x26f   : > { %564 = vrot.lane.b32.xlu1 %v477_v35, %s1283_s24 }
 0x273   : > { %588 = vperm.xlu1 %1203, %v1082_v36   ;;  %v1089_v36 = vld [vmem:[%s989_s13 + $0x6] sm:$0x3] }
 0x2df   : > { %v468_v37 = vpop.permute.xlu0 %467 }
 0x2e0   : > { %v470_v38 = vadd.f32 %v468_v37, %v1373_v6 }
 0x2e1   : > { %v565_v50 = vpop.permute.xlu1 %564 }
 0x2e2   : > { %598 = vrot.lane.b32.xlu1 %v470_v38, %s1284_s26  ;;  %1123 = vmatmul.mubr.msk.f32.vlgmr.msra.gmra.mrb[0].mxu1 %vm343_vm2, %v470_v38 }
 0x2e3   : > { %1150 = vmatpush3.bf16.msra.mxu1 %v1366_v4  ;;  %1136 = vmatprep.mubr.msk.f32.mxu1 %vm1279_vm1, %v1280_v5  ;;  %v618_v4 = vld [vmem:[%s617_s10] sm:$0x3] }
 0x2f2   : > { %v1419_v55 = vpop.permute.xlu1 %588 }
 0x354   : > { %v599_v58 = vpop.permute.xlu1 %598 }
 0x3b5   : > { %v551_v40 = vpop.f32.mrb[0].mxu1 }
 0x3b6   : > { %v555_v41 = vadd.f32 %v1078_v39, %v551_v40  ;;  %v1124_v42 = vpop.f32.mrb[1].mxu1 }
 0x3b8   : > { %1213 = vtanh.f32 %v555_v41  ;;  %v1080_v44 = vmul.f32 -1.442695, %v555_v41 }
 0x3ba   : > { %1215 = vpow2.f32 %v1080_v44 }
 0x3c2   : > { %v1214_v43 = vpop.eup %1213 }
 0x3c3   : > { %569 = vrot.lane.b32.xlu0 %v1214_v43, %s1282_s23 }
 0x3c4   : > { %v1216_v45 = vpop.eup %1215 }
 0x3c5   : > { %v559_v46 = vadd.f32 1.0, %v1216_v45 }
 0x3c7   : > { %1217 = vrcp.f32 %v559_v46 }
 0x3d1   : > { %v1218_v47 = vpop.eup %1217 }
 0x3d2   : > { %v567_v51 = vmul.f32 %v1218_v47, %v565_v50 }
 0x435   : > { %v570_v48 = vpop.permute.xlu0 %569 }
 0x436   : > { %v572_v49 = vmul.f32 %v1218_v47, %v570_v48 }
 0x438   : > { %574 = vrot.lane.b32.xlu0 %v572_v49, %s1283_s24 }
 0x4aa   : > { %v575_v52 = vpop.permute.xlu0 %574 }
 0x4ab   : > { %v577_v53 = vadd.f32 %v575_v52, %v567_v51 }
 0x4ad   : > { %1219 = vtanh.f32 %v577_v53  ;;  %v608_v54 = vsub.f32 %v577_v53, %v565_v50 }
 0x4af   : > { %v609_v56 = vmul.f32 %v608_v54, %v1419_v55 }
 0x4b1   : > { %611 = vrot.lane.b32.xlu1 %v609_v56, %s1286_s28 }
 0x4b7   : > { %v1220_v57 = vpop.eup %1219 }
 0x4b8   : > { %580 = vrot.lane.b32.xlu0 %v1220_v57, %s1285_s27 }
 0x523   : > { %v612_v59 = vpop.permute.xlu1 %611 }
 0x524   : > { %v614_v60 = vadd.f32 %v612_v59, %v477_v35 }
 0x526   : > { %701 = vrot.lane.b32.xlu1 %v614_v60, %s1283_s24 }
 0x52a   : > { %725 = vperm.xlu1 %1203, %v722_v61   ;;  %v581_v62 = vpop.permute.xlu0 %580 }
 0x52b   : > { %v583_v63 = vmul.f32 %v1218_v47, %v581_v62 }
 0x52d   : > { %v601_v0 = vsub.f32 %v583_v63, %v599_v58  ;;  %v591_v35 = vmul.f32 %v1419_v55, %v583_v63 }
 0x52f   : > { %v602_v1 = vmul.f32 %v601_v0, %v1419_v55  ;;  %v453_v55 = vmul.f32 %v1394_v27, %v1398_v31 }
 0x531   : > { %604 = vrot.lane.b32.xlu0 %v602_v1, %s1287_s30 }
 0x598   : > { %v702_v15 = vpop.permute.xlu1 %701 }
 0x5a3   : > { %v605_v2 = vpop.permute.xlu0 %604 }
 0x5a4   : > { %v607_v3 = vadd.f32 %v605_v2, %v470_v38 }
 0x5a6   : > { %735 = vrot.lane.b32.xlu1 %v607_v3, %s1284_s26  ;;  %1130 = vmatmul.mubr.msk.f32.vlgmr.msra.gmra.mrb[2].mxu0 %vm343_vm2, %v607_v3 }
 0x5a9   : > { %v1438_v20 = vpop.permute.xlu1 %725 }
 0x618   : > { %v736_v23 = vpop.permute.xlu1 %735 }
 0x679   : > { %v688_v5 = vpop.f32.mrb[2].mxu0 }
 0x67a   : > { %v692_v6 = vadd.f32 %v688_v5, %v618_v4  ;;  %v1131_v7 = vpop.f32.mrb[3].mxu0 }
 0x67c   : > { %1221 = vtanh.f32 %v692_v6  ;;  %v1087_v9 = vmul.f32 -1.442695, %v692_v6 }
 0x67e   : > { %1223 = vpow2.f32 %v1087_v9 }
 0x686   : > { %v1222_v8 = vpop.eup %1221 }
 0x687   : > { %706 = vrot.lane.b32.xlu0 %v1222_v8, %s1282_s23 }
 0x688   : > { %v1224_v10 = vpop.eup %1223 }
 0x689   : > { %v696_v11 = vadd.f32 1.0, %v1224_v10 }
 0x68b   : > { %1225 = vrcp.f32 %v696_v11 }
 0x695   : > { %v1226_v12 = vpop.eup %1225 }
 0x696   : > { %v704_v16 = vmul.f32 %v1226_v12, %v702_v15 }
 0x6f9   : > { %v707_v13 = vpop.permute.xlu0 %706 }
 0x6fa   : > { %v709_v14 = vmul.f32 %v1226_v12, %v707_v13 }
 0x6fc   : > { %711 = vrot.lane.b32.xlu0 %v709_v14, %s1283_s24 }
 0x76e   : > { %v712_v17 = vpop.permute.xlu0 %711 }
 0x76f   : > { %v714_v18 = vadd.f32 %v712_v17, %v704_v16 }
 0x771   : > { %1227 = vtanh.f32 %v714_v18  ;;  %v745_v19 = vsub.f32 %v714_v18, %v702_v15 }
 0x773   : > { %v746_v21 = vmul.f32 %v745_v19, %v1438_v20 }
 0x775   : > { %748 = vrot.lane.b32.xlu1 %v746_v21, %s1286_s28 }
 0x77b   : > { %v1228_v22 = vpop.eup %1227 }
 0x77c   : > { %717 = vrot.lane.b32.xlu0 %v1228_v22, %s1285_s27 }
 0x7e7   : > { %v749_v24 = vpop.permute.xlu1 %748 }
 0x7e8   : > { %v751_v25 = vadd.f32 %v749_v24, %v614_v60 }
 0x7ea   : > { %839 = vrot.lane.b32.xlu1 %v751_v25, %s1283_s24 }
 0x7ee   : > { %863 = vperm.xlu1 %1203, %v1093_v26   ;;  %v718_v28 = vpop.permute.xlu0 %717 }
 0x7ef   : > { %v720_v29 = vmul.f32 %v1226_v12, %v718_v28 }
 0x7f1   : > { %v738_v30 = vsub.f32 %v720_v29, %v736_v23  ;;  %v728_v0 = vmul.f32 %v1438_v20, %v720_v29 }
 0x7f3   : > { %v739_v32 = vmul.f32 %v738_v30, %v1438_v20 }
 0x7f5   : > { %741 = vrot.lane.b32.xlu0 %v739_v32, %s1287_s30 }
 0x85c   : > { %v840_v47 = vpop.permute.xlu1 %839 }
 0x867   : > { %v742_v33 = vpop.permute.xlu0 %741 }
 0x868   : > { %v744_v34 = vadd.f32 %v742_v33, %v607_v3 }
 0x86a   : > { %873 = vrot.lane.b32.xlu1 %v744_v34, %s1284_s26  ;;  %1137 = vmatmul.mubr.msk.f32.vlgmr.msra.gmra.mrb[2].mxu1 %vm343_vm2, %v744_v34 }
 0x86d   : > { %v864_v52 = vpop.permute.xlu1 %863 }
 0x86e   : > { %593 = vrot.lane.b32.xlu1 %v591_v35, %s1287_s30 }
 0x8dc   : > { %v874_v56 = vpop.permute.xlu1 %873 }
 0x8e0   : > { %v594_v57 = vpop.permute.xlu1 %593 }
 0x93d   : > { %v826_v37 = vpop.f32.mrb[2].mxu1 }
 0x93e   : > { %v830_v38 = vadd.f32 %v1089_v36, %v826_v37  ;;  %v1138_v39 = vpop.f32.mrb[3].mxu1 }
 0x940   : > { %1229 = vtanh.f32 %v830_v38  ;;  %v1091_v41 = vmul.f32 -1.442695, %v830_v38 }
 0x942   : > { %1231 = vpow2.f32 %v1091_v41 }
 0x94a   : > { %v1230_v40 = vpop.eup %1229 }
 0x94b   : > { %844 = vrot.lane.b32.xlu0 %v1230_v40, %s1282_s23 }
 0x94c   : > { %v1232_v42 = vpop.eup %1231 }
 0x94d   : > { %v834_v43 = vadd.f32 1.0, %v1232_v42 }
 0x94f   : > { %1233 = vrcp.f32 %v834_v43 }
 0x959   : > { %v1234_v44 = vpop.eup %1233 }
 0x95a   : > { %v842_v48 = vmul.f32 %v1234_v44, %v840_v47 }
 0x9bd   : > { %v845_v45 = vpop.permute.xlu0 %844 }
 0x9be   : > { %v847_v46 = vmul.f32 %v1234_v44, %v845_v45 }
 0x9c0   : > { %849 = vrot.lane.b32.xlu0 %v847_v46, %s1283_s24 }
 0xa32   : > { %v850_v49 = vpop.permute.xlu0 %849 }
 0xa33   : > { %v852_v50 = vadd.f32 %v850_v49, %v842_v48 }
 0xa35   : > { %1235 = vtanh.f32 %v852_v50  ;;  %v883_v51 = vsub.f32 %v852_v50, %v840_v47 }
 0xa37   : > { %v884_v53 = vmul.f32 %v883_v51, %v864_v52 }
 0xa39   : > { %886 = vrot.lane.b32.xlu1 %v884_v53, %s1286_s28 }
 0xa3f   : > { %v1236_v54 = vpop.eup %1235 }
 0xa40   : > { %855 = vrot.lane.b32.xlu0 %v1236_v54, %s1285_s27 }
 0xa44   : > { %455 = vrot.lane.b32.xlu0 %v453_v55, %s1287_s30 }
 0xaab   : > { %v887_v58 = vpop.permute.xlu1 %886 }
 0xaac   : > { %v889_v59 = vadd.f32 %v887_v58, %v751_v25 }
 0xaae   : > { %891 = vst.msk [vmem:[#allocation3] sm:$0x3] %vm459_vm3, %v889_v59 }
 0xab2   : > { %v856_v60 = vpop.permute.xlu0 %855 }
 0xab3   : > { %v858_v61 = vmul.f32 %v1234_v44, %v856_v60 }
 0xab5   : > { %v866_v62 = vmul.f32 %v864_v52, %v858_v61  ;;  %v876_v63 = vsub.f32 %v858_v61, %v874_v56 }
 0xab6   : > { %v456_v27 = vpop.permute.xlu0 %455 }
 0xab7   : > { %460 = vst.msk [vmem:[%s458_s8] sm:$0x3] %vm459_vm3, %v456_v27  ;;  %868 = vrot.lane.b32.xlu1 %v866_v62, %s1287_s30  ;;  %v877_v31 = vmul.f32 %v876_v63, %v864_v52 }
 0xab8   : > { %1084 = vst.msk [vmem:[%s979_s11 + $0x2] sm:$0x3] %vm459_vm3, %v594_v57 }
 0xab9   : > { %879 = vrot.lane.b32.xlu0 %v877_v31, %s1287_s30 }
 0xabd   : > { %730 = vrot.lane.b32.xlu0 %v728_v0, %s1287_s30 }
 0xb29   : > { %v869_v4 = vpop.permute.xlu1 %868 }
 0xb2b   : > { %v880_v1 = vpop.permute.xlu0 %879 }
 0xb2c   : > { %v882_v2 = vadd.f32 %v880_v1, %v744_v34 }
 0xb2e   : > { %890 = vst.msk [vmem:[#allocation2] sm:$0x3] %vm459_vm3, %v882_v2 }
 0xb2f   : > { %v731_v3 = vpop.permute.xlu0 %730 }
 0xb30   : > { %734 = vst.msk [vmem:[%s733_s12] sm:$0x3] %vm459_vm3, %v731_v3 }
 0xb31   : > { %1095 = vst.msk [vmem:[%s997_s22 + $0x6] sm:$0x3] %vm459_vm3, %v869_v4 }
 0xb32 PF: > { %s13_s16 = sadd.s32 1, %s1275_s16   ;;  %s1501_s12 = smov %s1267_s14 }
 0xb33   : > { %p10_p8 = scmp.ge.s32.totalorder %s13_s16, 8   ;;  %s1502_s13 = smov %s1271_s15 }
 0xb34   : > { %s1503_s14 = smov %s1506_s17  ;;  %s1504_s15 = smov %s1510_s18 }
 0xb35   :  { %12 = sbr.rel (!%p10_p8) target bundleno = 3 (0x3), region = 84 }

</bundles_post_ra>
